<compile_context>
chip_gen: v7x
topology: tpu7x:2x2x1
jax: 0.10.0
libtpu: 0.0.40
codegen_flags: <defaults>
</compile_context>

<pallas_src>
import jax
import jax.numpy as jnp
from jax.experimental import pallas as pl
from jax.experimental.pallas import tpu as pltpu


def _round_up(n, m):
    return ((n + m - 1) // m) * m


def _dual_tensorcore_chip():
    """True on chips with 2 TensorCores per device (v7x); else False."""
    try:
        kind = jax.devices()[0].device_kind.lower()
    except Exception:
        return False
    return "v7" in kind


def classification_kernel(lhs_ref, pool_ref, convw_ref, fcw_ref, fcb_ref,
                          out_ref, acc_ref):
    """Grid = (batch tiles [parallel], row blocks [arbitrary, reduction]).

    lhs_ref:   (ROW_BLK, K)      bf16 im2col rows of this block (K unpadded)
    pool_ref:  (BGpad, ROW_BLK)  f32 GAP weights (1/(H*W) where row -> image)
    convw_ref: (K, Cpad)         bf16 conv weights as a matrix
    fcw_ref:   (Cpad, NCpad)     bf16 classifier weight
    fcb_ref:   (1, NCpad)        f32 classifier bias
    out_ref:   (BGpad, NCpad)    f32 relu(backbone(x)) for this batch tile
    acc_ref:   (BGpad, Cpad)     f32 GAP accumulator (VMEM scratch)
    """
    r = pl.program_id(1)
    last = pl.num_programs(1) - 1

    @pl.when(r == 0)
    def _init():
        acc_ref[...] = jnp.zeros_like(acc_ref)

    # Conv for this row block: one MXU matmul, bf16 in / f32 accumulate.
    conv = jnp.dot(lhs_ref[...], convw_ref[...],
                   preferred_element_type=jnp.float32)
    conv = jnp.maximum(conv, 0.0)                     # backbone ReLU

    # Global-average-pool partial sum as an MXU matmul (no XLU reduction,
    # no (rows, Cpad) reshape): acc[b, c] += sum_j pool[b, j] * conv[j, c].
    acc_ref[...] += jnp.dot(pool_ref[...], conv,
                            preferred_element_type=jnp.float32)

    @pl.when(r == last)
    def _finalize():
        feat = acc_ref[...]                           # (BGpad, Cpad), = mean
        logits = jnp.dot(feat.astype(fcw_ref.dtype), fcw_ref[...],
                         preferred_element_type=jnp.float32) + fcb_ref[...]
        # Module forward: x = backbone(x); x = relu(x).
        out_ref[...] = jnp.maximum(logits, 0.0).astype(out_ref.dtype)


def classification_model_forward(x_nchw, conv_w, fc_w, fc_b):
    """x_nchw: (B, Cin, H, W) f32 -> (B, num_classes) f32 = relu(backbone(x))."""
    B, Cin, H, W = x_nchw.shape
    KH, KW, _, Cfeat = conv_w.shape
    num_classes = fc_b.shape[0]

    LANES = 128
    K = KH * KW * Cin                       # true contraction width (NOT padded)
    Cpad = _round_up(Cfeat, LANES)
    NCpad = _round_up(num_classes, LANES)

    # Batch tiling: 2 "parallel" tiles only on dual-TensorCore chips (v7x);
    # on v5e/v6e a single tile avoids pure grid-step overhead and keeps M big.
    G = 2 if (_dual_tensorcore_chip() and B >= 2 and B % 2 == 0) else 1
    BG = B // G
    BGpad = _round_up(BG, 8)                # sublane-aligned output/acc rows

    # Row (spatial) tiling bounds VMEM to ~ROW_BLK*K per buffer instead of
    # the whole im2col block plus a full f32 conv temporary.
    rows_tile = BG * H * W
    ROW_BLK = min(1024, _round_up(rows_tile, 16))   # bf16 min sublane tile: 16
    rows_tile_pad = _round_up(rows_tile, ROW_BLK)
    R = rows_tile_pad // ROW_BLK

    # ---- wrapper-side layout plumbing (glue, not the hot path) ----
    pad_h, pad_w = (KH - 1) // 2, (KW - 1) // 2
    x_nhwc = jnp.transpose(x_nchw, (0, 2, 3, 1))
    x_pad = jnp.pad(x_nhwc, ((0, 0),
                             (pad_h, KH - 1 - pad_h),
                             (pad_w, KW - 1 - pad_w),
                             (0, 0)))
    # im2col, taps ordered (kh, kw, cin) to match conv_w.reshape(K, Cfeat).
    # Cast to bf16; keep K un-padded (full-extent last dim is a legal block).
    taps = [x_pad[:, kh:kh + H, kw:kw + W, :]
            for kh in range(KH) for kw in range(KW)]
    lhs = jnp.concatenate(taps, axis=-1).reshape(B * H * W, K)
    lhs = lhs.reshape(G, rows_tile, K)
    lhs = jnp.pad(lhs, ((0, 0), (0, rows_tile_pad - rows_tile), (0, 0)))
    lhs = lhs.reshape(G * rows_tile_pad, K).astype(jnp.bfloat16)

    # Per-tile GAP pooling matrix: pool[b, j] = 1/(H*W) iff row j belongs to
    # local image b (0 on padded rows / padded batch rows). Tile-invariant.
    row_img = jnp.arange(rows_tile_pad) // (H * W)
    valid = jnp.arange(rows_tile_pad) < rows_tile
    pool = ((row_img[None, :] == jnp.arange(BGpad)[:, None]) & valid[None, :])
    pool = pool.astype(jnp.float32) / float(H * W)

    convw = jnp.pad(conv_w.reshape(K, Cfeat),
                    ((0, 0), (0, Cpad - Cfeat))).astype(jnp.bfloat16)
    fcw = jnp.pad(fc_w, ((0, Cpad - Cfeat),
                         (0, NCpad - num_classes))).astype(jnp.bfloat16)
    fcb = jnp.pad(fc_b, (0, NCpad - num_classes)).reshape(1, NCpad)
    fcb = fcb.astype(jnp.float32)

    grid_spec = pltpu.PrefetchScalarGridSpec(
        num_scalar_prefetch=0,
        grid=(G, R),                                    # reduction axis last
        in_specs=[
            pl.BlockSpec((ROW_BLK, K), lambda g, r: (g * R + r, 0)),
            pl.BlockSpec((BGpad, ROW_BLK), lambda g, r: (0, r)),
            pl.BlockSpec((K, Cpad), lambda g, r: (0, 0)),
            pl.BlockSpec((Cpad, NCpad), lambda g, r: (0, 0)),
            pl.BlockSpec((1, NCpad), lambda g, r: (0, 0)),
        ],
        out_specs=pl.BlockSpec((BGpad, NCpad), lambda g, r: (g, 0)),
        scratch_shapes=[pltpu.VMEM((BGpad, Cpad), jnp.float32)],
    )

    flops = (2 * G * rows_tile_pad * K * Cpad           # conv matmul
             + 2 * G * rows_tile_pad * BGpad * Cpad     # GAP pooling matmul
             + 2 * G * BGpad * Cpad * NCpad)            # FC head
    bytes_accessed = (lhs.size * 2 + G * pool.size * 4
                      + convw.size * 2 + fcw.size * 2 + fcb.size * 4
                      + G * BGpad * NCpad * 4)
    per_step_vmem = (2 * ROW_BLK * K * 2                # lhs bf16, dbl-buffered
                     + 2 * BGpad * ROW_BLK * 4          # pool f32, dbl-buffered
                     + K * Cpad * 2 + Cpad * NCpad * 2 + NCpad * 4
                     + 2 * BGpad * NCpad * 4            # output block
                     + BGpad * Cpad * 4                 # accumulator scratch
                     + ROW_BLK * Cpad * 4)              # f32 conv temporary
    vmem_limit = int(max(32 * 1024 * 1024,
                         min(2 * per_step_vmem, 48 * 1024 * 1024)))

    out_padded = pl.pallas_call(
        classification_kernel,
        out_shape=jax.ShapeDtypeStruct((G * BGpad, NCpad), jnp.float32),
        grid_spec=grid_spec,
        compiler_params=pltpu.CompilerParams(
            dimension_semantics=("parallel", "arbitrary"),
            vmem_limit_bytes=vmem_limit),
        cost_estimate=pl.CostEstimate(flops=int(flops), transcendentals=0,
                                      bytes_accessed=int(bytes_accessed)),
    )(lhs, pool, convw, fcw, fcb)

    # Drop padded batch rows and class columns.
    out = out_padded.reshape(G, BGpad, NCpad)[:, :BG, :num_classes]
    return out.reshape(B, num_classes)


def reference_forward(x_nchw, conv_w, fc_w, fc_b):
    """Pure-JAX (f32) reference of the same synthetic forward pass."""
    B, Cin, H, W = x_nchw.shape
    KH, KW, _, Cfeat = conv_w.shape
    pad_h, pad_w = (KH - 1) // 2, (KW - 1) // 2
    x = jnp.transpose(x_nchw, (0, 2, 3, 1))
    x = jnp.pad(x, ((0, 0), (pad_h, KH - 1 - pad_h),
                    (pad_w, KW - 1 - pad_w), (0, 0)))
    out = jnp.zeros((B, H, W, Cfeat), jnp.float32)
    for kh in range(KH):
        for kw in range(KW):
            out = out + jnp.einsum("bhwc,cf->bhwf",
                                   x[:, kh:kh + H, kw:kw + W, :],
                                   conv_w[kh, kw])
    feat = jnp.mean(jnp.maximum(out, 0.0), axis=(1, 2))   # GAP  (B, Cfeat)
    logits = feat @ fc_w + fc_b                            # (B, num_classes)
    return jnp.maximum(logits, 0.0)                        # forward() ReLU


if __name__ == "__main__":
    def _run_case(key, B, Cin, H, W, Cfeat, num_classes):
        k_x, k_cw, k_fw, k_fb = jax.random.split(key, 4)
        x = jax.random.normal(k_x, (B, Cin, H, W), dtype=jnp.float32)
        conv_w = 0.1 * jax.random.normal(k_cw, (3, 3, Cin, Cfeat),
                                         dtype=jnp.float32)
        fc_w = 0.1 * jax.random.normal(k_fw, (Cfeat, num_classes),
                                       dtype=jnp.float32)
        fc_b = 0.1 * jax.random.normal(k_fb, (num_classes,), dtype=jnp.float32)

        out = jax.block_until_ready(
            classification_model_forward(x, conv_w, fc_w, fc_b))
        ref = reference_forward(x, conv_w, fc_w, fc_b)
        assert out.shape == (B, num_classes), out.shape
        # bf16 operands / f32 accumulation vs. f32 reference -> loose tol.
        assert jnp.allclose(out, ref, atol=2e-2, rtol=2e-2), (out, ref)

    key = jax.random.PRNGKey(0)
    k1, k2 = jax.random.split(key)
    # Primary small config implied by the module interface.
    _run_case(k1, B=2, Cin=4, H=16, W=16, Cfeat=32, num_classes=5)
    # Larger spatial: exercises multi-row-block GAP accumulation + row padding.
    _run_case(k2, B=2, Cin=3, H=48, W=48, Cfeat=16, num_classes=10)

    print("KERNEL_OK")
</pallas_src>

<mosaic_0001>
module attributes {stable_mosaic.version = 11 : i64} {
  func.func @classification_kernel(%arg0: i32, %arg1: i32, %arg2: memref<512x36xbf16, #tpu.memory_space<vmem>>, %arg3: memref<8x512xf32, #tpu.memory_space<vmem>>, %arg4: memref<36x128xbf16, #tpu.memory_space<vmem>>, %arg5: memref<128x128xbf16, #tpu.memory_space<vmem>>, %arg6: memref<1x128xf32, #tpu.memory_space<vmem>>, %arg7: memref<8x128xf32, #tpu.memory_space<vmem>>, %arg8: memref<8x128xf32, #tpu.memory_space<vmem>>) attributes {dimension_semantics = [#tpu.dimension_semantics<parallel>, #tpu.dimension_semantics<arbitrary>], iteration_bounds = array<i64: 1, 1>, scalar_prefetch = 0 : i64, scratch_operands = 1 : i64, tpu.core_type = #tpu.core_type<tc>, window_params = [{transform_indices = @transform_0, window_bounds = array<i64: 512, 36>}, {transform_indices = @transform_1, window_bounds = array<i64: 8, 512>}, {pipeline_mode = #tpu.pipeline_mode<synchronous>, transform_indices = @transform_2, window_bounds = array<i64: 36, 128>}, {pipeline_mode = #tpu.pipeline_mode<synchronous>, transform_indices = @transform_3, window_bounds = array<i64: 128, 128>}, {pipeline_mode = #tpu.pipeline_mode<synchronous>, transform_indices = @transform_4, window_bounds = array<i64: 1, 128>}, {transform_indices = @transform_5, window_bounds = array<i64: 8, 128>}]} {
    %c0_i32 = arith.constant 0 : i32
    %0 = arith.cmpi eq, %arg1, %c0_i32 : i32
    %1 = arith.extui %0 : i1 to i32
    %c0_i32_0 = arith.constant 0 : i32
    %2 = arith.cmpi ne, %1, %c0_i32_0 : i32
    scf.if %2 {
      %cst_14 = arith.constant 0.000000e+00 : f32
      %16 = vector.broadcast %cst_14 : f32 to vector<8x128xf32>
      %c0_15 = arith.constant 0 : index
      %c0_16 = arith.constant 0 : index
      %17 = vector.load %arg8[%c0_15, %c0_16] : memref<8x128xf32, #tpu.memory_space<vmem>>, vector<8x128xf32>
      tpu.vector_store %arg8[%c0_15, %c0_16], %16 {strides = array<i32>} : memref<8x128xf32, #tpu.memory_space<vmem>>, vector<8x128xf32>,
    } else {
    }
    %c0 = arith.constant 0 : index
    %c0_1 = arith.constant 0 : index
    %3 = vector.load %arg2[%c0, %c0_1] : memref<512x36xbf16, #tpu.memory_space<vmem>>, vector<512x36xbf16>
    %c0_2 = arith.constant 0 : index
    %c0_3 = arith.constant 0 : index
    %4 = vector.load %arg4[%c0_2, %c0_3] : memref<36x128xbf16, #tpu.memory_space<vmem>>, vector<36x128xbf16>
    %cst = arith.constant dense<0.000000e+00> : vector<512x128xf32>
    %5 = tpu.matmul %3, %4, %cst {dimension_numbers = #tpu.dot_dimension_numbers<[1], [0], [0], [1], [0, 0, 1, 1], [], []>} : vector<512x36xbf16>, vector<36x128xbf16>, vector<512x128xf32> -> vector<512x128xf32>
    %cst_4 = arith.constant 0.000000e+00 : f32
    %6 = vector.broadcast %cst_4 : f32 to vector<512x128xf32>
    %7 = arith.maximumf %5, %6 : vector<512x128xf32>
    %c0_5 = arith.constant 0 : index
    %c0_6 = arith.constant 0 : index
    %8 = vector.load %arg8[%c0_5, %c0_6] : memref<8x128xf32, #tpu.memory_space<vmem>>, vector<8x128xf32>
    %c0_7 = arith.constant 0 : index
    %c0_8 = arith.constant 0 : index
    %9 = vector.load %arg3[%c0_7, %c0_8] : memref<8x512xf32, #tpu.memory_space<vmem>>, vector<8x512xf32>
    %cst_9 = arith.constant dense<0.000000e+00> : vector<8x128xf32>
    %10 = tpu.matmul %9, %7, %cst_9 {dimension_numbers = #tpu.dot_dimension_numbers<[1], [0], [0], [1], [0, 0, 1, 1], [], []>} : vector<8x512xf32>, vector<512x128xf32>, vector<8x128xf32> -> vector<8x128xf32>
    %11 = arith.addf %8, %10 : vector<8x128xf32>
    %c0_10 = arith.constant 0 : index
    %c0_11 = arith.constant 0 : index
    %12 = vector.load %arg8[%c0_10, %c0_11] : memref<8x128xf32, #tpu.memory_space<vmem>>, vector<8x128xf32>
    tpu.vector_store %arg8[%c0_10, %c0_11], %11 {strides = array<i32>} : memref<8x128xf32, #tpu.memory_space<vmem>>, vector<8x128xf32>,
    %c0_i32_12 = arith.constant 0 : i32
    %13 = arith.cmpi eq, %arg1, %c0_i32_12 : i32
    %14 = arith.extui %13 : i1 to i32
    %c0_i32_13 = arith.constant 0 : i32
    %15 = arith.cmpi ne, %14, %c0_i32_13 : i32
    scf.if %15 {
      %c0_14 = arith.constant 0 : index
      %c0_15 = arith.constant 0 : index
      %16 = vector.load %arg8[%c0_14, %c0_15] : memref<8x128xf32, #tpu.memory_space<vmem>>, vector<8x128xf32>
      %17 = arith.truncf %16 : vector<8x128xf32> to vector<8x128xbf16>
      %c0_16 = arith.constant 0 : index
      %c0_17 = arith.constant 0 : index
      %18 = vector.load %arg5[%c0_16, %c0_17] : memref<128x128xbf16, #tpu.memory_space<vmem>>, vector<128x128xbf16>
      %cst_18 = arith.constant dense<0.000000e+00> : vector<8x128xf32>
      %19 = tpu.matmul %17, %18, %cst_18 {dimension_numbers = #tpu.dot_dimension_numbers<[1], [0], [0], [1], [0, 0, 1, 1], [], []>} : vector<8x128xbf16>, vector<128x128xbf16>, vector<8x128xf32> -> vector<8x128xf32>
      %c0_19 = arith.constant 0 : index
      %c0_20 = arith.constant 0 : index
      %20 = vector.load %arg6[%c0_19, %c0_20] : memref<1x128xf32, #tpu.memory_space<vmem>>, vector<1x128xf32>
      %21 = vector.broadcast %20 : vector<1x128xf32> to vector<8x128xf32>
      %22 = arith.addf %19, %21 : vector<8x128xf32>
      %cst_21 = arith.constant 0.000000e+00 : f32
      %23 = vector.broadcast %cst_21 : f32 to vector<8x128xf32>
      %24 = arith.maximumf %22, %23 : vector<8x128xf32>
      %c0_22 = arith.constant 0 : index
      %c0_23 = arith.constant 0 : index
      %25 = vector.load %arg7[%c0_22, %c0_23] : memref<8x128xf32, #tpu.memory_space<vmem>>, vector<8x128xf32>
      tpu.vector_store %arg7[%c0_22, %c0_23], %24 {strides = array<i32>} : memref<8x128xf32, #tpu.memory_space<vmem>>, vector<8x128xf32>,
    } else {
    }
    return
  }
  func.func @transform_0(%arg0: i32, %arg1: i32) -> (i32, i32) {
    %c1_i32 = arith.constant 1 : i32
    %0 = arith.muli %arg0, %c1_i32 : i32
    %1 = arith.addi %0, %arg1 : i32
    %c0_i32 = arith.constant 0 : i32
    %c0_i32_0 = arith.constant 0 : i32
    return %1, %c0_i32 : i32, i32
  }
  func.func @transform_1(%arg0: i32, %arg1: i32) -> (i32, i32) {
    %c0_i32 = arith.constant 0 : i32
    %c0_i32_0 = arith.constant 0 : i32
    return %c0_i32, %arg1 : i32, i32
  }
  func.func @transform_2(%arg0: i32, %arg1: i32) -> (i32, i32) {
    %c0_i32 = arith.constant 0 : i32
    %c0_i32_0 = arith.constant 0 : i32
    %c0_i32_1 = arith.constant 0 : i32
    return %c0_i32, %c0_i32_0 : i32, i32
  }
  func.func @transform_3(%arg0: i32, %arg1: i32) -> (i32, i32) {
    %c0_i32 = arith.constant 0 : i32
    %c0_i32_0 = arith.constant 0 : i32
    %c0_i32_1 = arith.constant 0 : i32
    return %c0_i32, %c0_i32_0 : i32, i32
  }
  func.func @transform_4(%arg0: i32, %arg1: i32) -> (i32, i32) {
    %c0_i32 = arith.constant 0 : i32
    %c0_i32_0 = arith.constant 0 : i32
    %c0_i32_1 = arith.constant 0 : i32
    return %c0_i32, %c0_i32_0 : i32, i32
  }
  func.func @transform_5(%arg0: i32, %arg1: i32) -> (i32, i32) {
    %c0_i32 = arith.constant 0 : i32
    %c0_i32_0 = arith.constant 0 : i32
    return %arg0, %c0_i32 : i32, i32
  }
}

</mosaic_0001>

<bundles_post_ra>
// kernel: tpu_custom_call.1
= control target key start
LH: loop header
LB: loop body
LE: loop exit
PB: predicated region body
PF: predicated region fallthrough
CT: control target
= control target key end

     0   :  { %vm293_vm0 = vcmask 293888   ;;  %vm390_vm1 = vcmask 1041408   ;;  %s1671_s0 = inlined_call_operand.vmem [shape: bf16[512,36], index: 0, kind: input, shape index: {}]   ;;  %s1672_s1 = inlined_call_operand.vmem [shape: f32[8,512], index: 1, kind: input, shape index: {}]   ;;  %s1673_s2 = inlined_call_operand.vmem [shape: bf16[36,128], index: 2, kind: input, shape index: {}]   ;;  %s1674_s3 = inlined_call_operand.vmem [shape: bf16[128,128], index: 3, kind: input, shape index: {}]   ;;  %s1675_s4 = inlined_call_operand.vmem [shape: f32[1,128], index: 4, kind: input, shape index: {}]   ;;  %s1676_s5 = inlined_call_operand.hbm [shape: f32[8,128], index: 5, kind: output, shape index: {}]  }
   0x1   :  { %v1380_v0 = vld [vmem:[%s1673_s2] sm:$0xff]   ;;  %v1381_v1 = vld [vmem:[%s1673_s2 + $0x8] sm:$0xff]   ;;  %v1382_v2 = vld [vmem:[%s1673_s2 + $0x10] ss:$0 sps:$4 sm:$0x33]  }
   0x2   :  { %1222 = vmatprep.subr.bf16.mxu0 %v1380_v0  ;;  %v1383_v3 = vld [vmem:[%s1671_s0] sm:$0xff]   ;;  %v392_v4 = vsel %vm390_vm1, %v1382_v2, 0  ;;  %v1384_v5 = vld [vmem:[%s1671_s0 + $0x8] sm:$0xff]   ;;  %v1385_v6 = vld [vmem:[%s1671_s0 + $0x10] sm:$0xff]  }
   0x3   :  { %1223 = vmatpush3.bf16.msra.mxu0 %v1380_v0  ;;  %1228 = vmatprep.mubr.msk.bf16.mxu0 %vm293_vm0, %v1383_v3  ;;  %v1386_v7 = vld [vmem:[%s1671_s0 + $0x18] sm:$0xff]   ;;  %v1387_v8 = vld [vmem:[%s1671_s0 + $0x20] sm:$0xff]   ;;  %v1388_v9 = vld [vmem:[%s1671_s0 + $0x28] sm:$0xff]  }
   0x4   :  { %1224 = vmatprep.subr.bf16.mxu0 %v1381_v1  ;;  %v1389_v10 = vld [vmem:[%s1671_s0 + $0x30] sm:$0xff]   ;;  %v1390_v11 = vld [vmem:[%s1671_s0 + $0x38] sm:$0xff]   ;;  %v1391_v12 = vld [vmem:[%s1671_s0 + $0x40] sm:$0xff]  }
   0x7   :  { %1225 = vmatpush3.bf16.msra.mxu0 %v1381_v1 }
   0x8   :  { %1376 = vmatprep.subr.msk.bf16.mxu0 %vm390_vm1, %v1382_v2 }
   0xb   :  { %1227 = vmatpush3.bf16.msra.mxu0 %v392_v4 }
   0xe   :  { %1229 = vmatmul.mubr.msk.bf16.vlgmr.msra.gmra.mrb[0].mxu0 %vm293_vm0, %v1384_v5 }
   0xf   :  { %1232 = vmatprep.mubr.msk.bf16.mxu0 %vm293_vm0, %v1385_v6 }
  0x16   :  { %1233 = vmatmul.mubr.msk.bf16.gmra.mrb[4].mxu0 %vm293_vm0, %v1386_v7 }
  0x17   :  { %1236 = vmatprep.mubr.msk.bf16.mxu0 %vm293_vm0, %v1387_v8 }
  0x1e   :  { %1237 = vmatmul.mubr.msk.bf16.gmra.mrb[8].mxu0 %vm293_vm0, %v1388_v9 }
  0x1f   :  { %1240 = vmatprep.mubr.msk.bf16.mxu0 %vm293_vm0, %v1389_v10 }
  0x26   :  { %1241 = vmatmul.mubr.msk.bf16.gmra.mrb[12].mxu0 %vm293_vm0, %v1390_v11 }
  0x27   :  { %1244 = vmatprep.mubr.msk.bf16.mxu0 %vm293_vm0, %v1391_v12 }
  0x28   :  { %10 = vsyncpa [#allocation4], 0  ;;  %v1392_v13 = vld [vmem:[%s1671_s0 + $0x48] sm:$0xff]   ;;  %v1393_v14 = vld [vmem:[%s1671_s0 + $0x50] sm:$0xff]   ;;  %vm1448_vm2 = vmmov 0   ;;  %s1449_s8 = smov [#allocation3]  }
  0x29   :  { %v1394_v15 = vld [vmem:[%s1671_s0 + $0x58] sm:$0xff]   ;;  %v1395_v16 = vld [vmem:[%s1671_s0 + $0x60] sm:$0xff]   ;;  %v1396_v17 = vld [vmem:[%s1671_s0 + $0x68] sm:$0xff]   ;;  %s1018_s9 = sshll.u32 %s1449_s8, 4  ;;  %s1019_s9 = int_to_ptr.vmem [resolvable:$true] %s1018_s9 }
  0x2a   :  { %v1397_v18 = vld [vmem:[%s1671_s0 + $0x70] sm:$0xff]   ;;  %v1398_v19 = vld [vmem:[%s1671_s0 + $0x78] sm:$0xff]   ;;  %v1399_v20 = vld [vmem:[%s1671_s0 + $0x80] sm:$0xff]   ;;  %p1428_p1 = scmp.lt.s32.totalorder %s1019_s9, %s1019_s9 }
  0x2b   :  { %v1400_v21 = vld [vmem:[%s1671_s0 + $0x88] sm:$0xff]   ;;  %v1401_v22 = vld [vmem:[%s1671_s0 + $0x90] sm:$0xff]   ;;  %v1402_v23 = vld [vmem:[%s1671_s0 + $0x98] sm:$0xff]  }
  0x2c   :  { %v1403_v24 = vld [vmem:[%s1671_s0 + $0xa0] sm:$0xff]   ;;  %v1404_v25 = vld [vmem:[%s1671_s0 + $0xa8] sm:$0xff]   ;;  %v1405_v26 = vld [vmem:[%s1671_s0 + $0xb0] sm:$0xff]  }
  0x2d   :  { %v1406_v27 = vld [vmem:[%s1671_s0 + $0xb8] sm:$0xff]   ;;  %v1407_v28 = vld [vmem:[%s1671_s0 + $0xc0] sm:$0xff]   ;;  %v1408_v29 = vld [vmem:[%s1671_s0 + $0xc8] sm:$0xff]  }
  0x2e   :  { %1245 = vmatmul.mubr.msk.bf16.gmra.mrb[16].mxu0 %vm293_vm0, %v1392_v13  ;;  %v1409_v30 = vld [vmem:[%s1671_s0 + $0xd0] sm:$0xff]   ;;  %v1410_v31 = vld [vmem:[%s1671_s0 + $0xd8] sm:$0xff]   ;;  %v1411_v32 = vld [vmem:[%s1671_s0 + $0xe0] sm:$0xff]  }
  0x2f   :  { %1248 = vmatprep.mubr.msk.bf16.mxu0 %vm293_vm0, %v1393_v14  ;;  %v1412_v33 = vld [vmem:[%s1671_s0 + $0xe8] sm:$0xff]   ;;  %v1413_v34 = vld [vmem:[%s1671_s0 + $0xf0] sm:$0xff]   ;;  %v1414_v35 = vld [vmem:[%s1671_s0 + $0xf8] sm:$0xff]  }
  0x30   :  { %v749_v36 = vld [vmem:[%s1672_s1 + $0x8] sm:$0xff] }
  0x31   :  { %816 = vmatprep.mubr.f32.mxu1 %v749_v36 }
  0x36   :  { %1249 = vmatmul.mubr.msk.bf16.gmra.mrb[20].mxu0 %vm293_vm0, %v1394_v15 }
  0x37   :  { %1252 = vmatprep.mubr.msk.bf16.mxu0 %vm293_vm0, %v1395_v16 }
  0x3e   :  { %1253 = vmatmul.mubr.msk.bf16.gmra.mrb[24].mxu0 %vm293_vm0, %v1396_v17 }
  0x3f   :  { %1256 = vmatprep.mubr.msk.bf16.mxu0 %vm293_vm0, %v1397_v18 }
  0x46   :  { %1257 = vmatmul.mubr.msk.bf16.gmra.mrb[28].mxu0 %vm293_vm0, %v1398_v19 }
  0x47   :  { %1260 = vmatprep.mubr.msk.bf16.mxu0 %vm293_vm0, %v1399_v20 }
  0x4e   :  { %1261 = vmatmul.mubr.msk.bf16.gmra.mrb[32].mxu0 %vm293_vm0, %v1400_v21 }
  0x4f   :  { %1264 = vmatprep.mubr.msk.bf16.mxu0 %vm293_vm0, %v1401_v22 }
  0x56   :  { %1265 = vmatmul.mubr.msk.bf16.gmra.mrb[36].mxu0 %vm293_vm0, %v1402_v23 }
  0x57   :  { %1268 = vmatprep.mubr.msk.bf16.mxu0 %vm293_vm0, %v1403_v24 }
  0x5e   :  { %1269 = vmatmul.mubr.msk.bf16.gmra.mrb[40].mxu0 %vm293_vm0, %v1404_v25 }
  0x5f   :  { %1272 = vmatprep.mubr.msk.bf16.mxu0 %vm293_vm0, %v1405_v26 }
  0x66   :  { %1273 = vmatmul.mubr.msk.bf16.gmra.mrb[44].mxu0 %vm293_vm0, %v1406_v27 }
  0x67   :  { %1276 = vmatprep.mubr.msk.bf16.mxu0 %vm293_vm0, %v1407_v28 }
  0x6e   :  { %1277 = vmatmul.mubr.msk.bf16.gmra.mrb[48].mxu0 %vm293_vm0, %v1408_v29 }
  0x6f   :  { %1280 = vmatprep.mubr.msk.bf16.mxu0 %vm293_vm0, %v1409_v30 }
  0x76   :  { %1281 = vmatmul.mubr.msk.bf16.gmra.mrb[52].mxu0 %vm293_vm0, %v1410_v31 }
  0x77   :  { %1284 = vmatprep.mubr.msk.bf16.mxu0 %vm293_vm0, %v1411_v32 }
  0x7e   :  { %1285 = vmatmul.mubr.msk.bf16.gmra.mrb[56].mxu0 %vm293_vm0, %v1412_v33 }
  0x7f   :  { %1288 = vmatprep.mubr.msk.bf16.mxu0 %vm293_vm0, %v1413_v34 }
  0x86   :  { %1289 = vmatmul.mubr.msk.bf16.gmra.mrb[60].mxu0 %vm293_vm0, %v1414_v35 }
  0xe1   :  { %v1230_v37 = vpop.f32.mrb[0].mxu0 }
  0xe2   :  { %v428_v38 = vpop.f32.mrb[1].mxu0  ;;  %v685_v40 = vmax.f32 %v1230_v37, 0.0 }
  0xe3   :  { %v1231_v39 = vpop.f32.mrb[2].mxu0  ;;  %v683_v43 = vmax.f32 %v428_v38, 0.0 }
  0xe4   :  { %v686_v41 = vmax.f32 %v1231_v39, 0.0  ;;  %v431_v42 = vpop.f32.mrb[3].mxu0 }
  0xe5   :  { %v684_v44 = vmax.f32 %v431_v42, 0.0 }
  0xe6   :  { %v1318_v45 = vpack.c.bf16 %v686_v41, %v685_v40 }
  0xe7   :  { %v1314_v46 = vpack.c.bf16 %v684_v44, %v683_v43 }
  0xe9   :  { %v1234_v47 = vpop.f32.mrb[4].mxu0 }
  0xea   :  { %v444_v48 = vpop.f32.mrb[5].mxu0  ;;  %v689_v50 = vmax.f32 %v1234_v47, 0.0 }
  0xeb   :  { %v1235_v49 = vpop.f32.mrb[6].mxu0  ;;  %v687_v53 = vmax.f32 %v444_v48, 0.0 }
  0xec   :  { %v690_v51 = vmax.f32 %v1235_v49, 0.0  ;;  %v447_v52 = vpop.f32.mrb[7].mxu0 }
  0xed   :  { %v688_v54 = vmax.f32 %v447_v52, 0.0 }
  0xee   :  { %v1326_v55 = vpack.c.bf16 %v690_v51, %v689_v50 }
  0xef   :  { %v1322_v56 = vpack.c.bf16 %v688_v54, %v687_v53 }
  0xf1   :  { %v1238_v57 = vpop.f32.mrb[8].mxu0 }
  0xf2   :  { %v460_v58 = vpop.f32.mrb[9].mxu0  ;;  %v693_v60 = vmax.f32 %v1238_v57, 0.0 }
  0xf3   :  { %v1239_v59 = vpop.f32.mrb[10].mxu0  ;;  %v691_v63 = vmax.f32 %v460_v58, 0.0 }
  0xf4   :  { %v694_v61 = vmax.f32 %v1239_v59, 0.0  ;;  %v463_v62 = vpop.f32.mrb[11].mxu0 }
  0xf5   :  { %v692_v0 = vmax.f32 %v463_v62, 0.0  ;;  %v748_v62 = vld [vmem:[%s1672_s1] sm:$0xff] }
  0xf6   :  { %v1334_v1 = vpack.c.bf16 %v694_v61, %v693_v60 }
  0xf7   :  { %v1330_v2 = vpack.c.bf16 %v692_v0, %v691_v63  ;;  %v751_v0 = vld [vmem:[%s1672_s1 + $0x18] sm:$0xff] }
  0xf9   :  { %v1242_v3 = vpop.f32.mrb[12].mxu0 }
  0xfa   :  { %v476_v4 = vpop.f32.mrb[13].mxu0  ;;  %v697_v6 = vmax.f32 %v1242_v3, 0.0 }
  0xfb   :  { %v1243_v5 = vpop.f32.mrb[14].mxu0  ;;  %v695_v9 = vmax.f32 %v476_v4, 0.0 }
  0xfc   :  { %v698_v7 = vmax.f32 %v1243_v5, 0.0  ;;  %v479_v8 = vpop.f32.mrb[15].mxu0 }
  0xfd   :  { %v696_v10 = vmax.f32 %v479_v8, 0.0 }
  0xfe   :  { %v1620_v11 = vpack.c.bf16 %v698_v7, %v697_v6 }
  0xff   :  { %v1338_v12 = vpack.c.bf16 %v696_v10, %v695_v9 }
 0x101   :  { %v1246_v13 = vpop.f32.mrb[16].mxu0 }
 0x102   :  { %v492_v14 = vpop.f32.mrb[17].mxu0  ;;  %v701_v16 = vmax.f32 %v1246_v13, 0.0 }
 0x103   :  { %v1247_v15 = vpop.f32.mrb[18].mxu0  ;;  %v699_v19 = vmax.f32 %v492_v14, 0.0 }
 0x104   :  { %v702_v17 = vmax.f32 %v1247_v15, 0.0  ;;  %v495_v18 = vpop.f32.mrb[19].mxu0 }
 0x105   :  { %v700_v20 = vmax.f32 %v495_v18, 0.0 }
 0x106   :  { %v1316_v21 = vpack.c.bf16 %v702_v17, %v701_v16 }
 0x107   :  { %v1312_v22 = vpack.c.bf16 %v700_v20, %v699_v19 }
 0x109   :  { %v1250_v23 = vpop.f32.mrb[20].mxu0  ;;  %1313 = vmatprep.subr.bf16.mxu1 %v1312_v22 }
 0x10a   :  { %v508_v24 = vpop.f32.mrb[21].mxu0  ;;  %1315 = vmatpush3.bf16.msra.mxu1 %v1314_v46  ;;  %v705_v26 = vmax.f32 %v1250_v23, 0.0 }
 0x10b   :  { %v1251_v25 = vpop.f32.mrb[22].mxu0  ;;  %1317 = vmatprep.subr.bf16.mxu1 %v1316_v21  ;;  %v703_v29 = vmax.f32 %v508_v24, 0.0 }
 0x10c   :  { %v706_v27 = vmax.f32 %v1251_v25, 0.0  ;;  %v511_v28 = vpop.f32.mrb[23].mxu0 }
 0x10d   :  { %v704_v30 = vmax.f32 %v511_v28, 0.0 }
 0x10e   :  { %v1324_v31 = vpack.c.bf16 %v706_v27, %v705_v26  ;;  %1319 = vmatpush3.bf16.msra.mxu1 %v1318_v45 }
 0x10f   :  { %v1320_v32 = vpack.c.bf16 %v704_v30, %v703_v29 }
 0x111   :  { %v1254_v33 = vpop.f32.mrb[24].mxu0  ;;  %1321 = vmatprep.subr.bf16.mxu1 %v1320_v32 }
 0x112   :  { %v524_v34 = vpop.f32.mrb[25].mxu0  ;;  %1323 = vmatpush3.bf16.msra.mxu1 %v1322_v56  ;;  %v709_v36 = vmax.f32 %v1254_v33, 0.0 }
 0x113   :  { %v1255_v35 = vpop.f32.mrb[26].mxu0  ;;  %1325 = vmatprep.subr.bf16.mxu1 %v1324_v31  ;;  %v707_v39 = vmax.f32 %v524_v34, 0.0 }
 0x114   :  { %v710_v37 = vmax.f32 %v1255_v35, 0.0  ;;  %v527_v38 = vpop.f32.mrb[27].mxu0 }
 0x115   :  { %v708_v40 = vmax.f32 %v527_v38, 0.0 }
 0x116   :  { %v1332_v41 = vpack.c.bf16 %v710_v37, %v709_v36  ;;  %1327 = vmatpush3.bf16.msra.mxu1 %v1326_v55 }
 0x117   :  { %v1328_v42 = vpack.c.bf16 %v708_v40, %v707_v39 }
 0x119   :  { %v1258_v43 = vpop.f32.mrb[28].mxu0  ;;  %1329 = vmatprep.subr.bf16.mxu1 %v1328_v42 }
 0x11a   :  { %v540_v44 = vpop.f32.mrb[29].mxu0  ;;  %1331 = vmatpush3.bf16.msra.mxu1 %v1330_v2  ;;  %v713_v46 = vmax.f32 %v1258_v43, 0.0 }
 0x11b   :  { %v1259_v45 = vpop.f32.mrb[30].mxu0  ;;  %1333 = vmatprep.subr.bf16.mxu1 %v1332_v41  ;;  %v711_v49 = vmax.f32 %v540_v44, 0.0 }
 0x11c   :  { %v714_v47 = vmax.f32 %v1259_v45, 0.0  ;;  %v543_v48 = vpop.f32.mrb[31].mxu0 }
 0x11d   :  { %v712_v50 = vmax.f32 %v543_v48, 0.0 }
 0x11e   :  { %v1340_v51 = vpack.c.bf16 %v714_v47, %v713_v46  ;;  %1335 = vmatpush3.bf16.msra.mxu1 %v1334_v1 }
 0x11f   :  { %v1336_v52 = vpack.c.bf16 %v712_v50, %v711_v49 }
 0x121   :  { %v1262_v53 = vpop.f32.mrb[32].mxu0  ;;  %1337 = vmatprep.subr.bf16.mxu1 %v1336_v52 }
 0x122   :  { %v556_v54 = vpop.f32.mrb[33].mxu0  ;;  %1339 = vmatpush3.bf16.msra.mxu1 %v1338_v12  ;;  %v717_v56 = vmax.f32 %v1262_v53, 0.0 }
 0x123   :  { %v1263_v55 = vpop.f32.mrb[34].mxu0  ;;  %1341 = vmatprep.subr.bf16.mxu1 %v1340_v51  ;;  %v715_v59 = vmax.f32 %v556_v54, 0.0 }
 0x124   :  { %v718_v57 = vmax.f32 %v1263_v55, 0.0  ;;  %v559_v58 = vpop.f32.mrb[35].mxu0 }
 0x125   :  { %v716_v60 = vmax.f32 %v559_v58, 0.0 }
 0x126   :  { %v1350_v61 = vpack.c.bf16 %v718_v57, %v717_v56  ;;  %1343 = vmatpush3.bf16.msra.mxu1 %v1620_v11 }
 0x127   :  { %v1346_v63 = vpack.c.bf16 %v716_v60, %v715_v59 }
 0x129   :  { %v1266_v1 = vpop.f32.mrb[36].mxu0  ;;  %817 = vmatmul.mubr.f32.vlgmr.msra.gmra.mrb[0].mxu1 %v748_v62 }
 0x12a   :  { %v572_v2 = vpop.f32.mrb[37].mxu0  ;;  %886 = vmatprep.mubr.f32.mxu1 %v751_v0  ;;  %v721_v4 = vmax.f32 %v1266_v1, 0.0 }
 0x12b   :  { %v1267_v3 = vpop.f32.mrb[38].mxu0  ;;  %v719_v7 = vmax.f32 %v572_v2, 0.0 }
 0x12c   :  { %v722_v5 = vmax.f32 %v1267_v3, 0.0  ;;  %v575_v6 = vpop.f32.mrb[39].mxu0 }
 0x12d   :  { %v720_v8 = vmax.f32 %v575_v6, 0.0 }
 0x12e   :  { %v1358_v9 = vpack.c.bf16 %v722_v5, %v721_v4 }
 0x12f   :  { %v1354_v10 = vpack.c.bf16 %v720_v8, %v719_v7  ;;  %v750_v7 = vld [vmem:[%s1672_s1 + $0x10] sm:$0xff]  ;;  %v1415_v8 = vld [vmem:[%s1674_s3] sm:$0xff]  }
 0x131   :  { %v1270_v11 = vpop.f32.mrb[40].mxu0 }
 0x132   :  { %v588_v12 = vpop.f32.mrb[41].mxu0  ;;  %v725_v14 = vmax.f32 %v1270_v11, 0.0  ;;  %v1417_v11 = vld [vmem:[%s1674_s3 + $0x10] sm:$0xff]  }
 0x133   :  { %v1271_v13 = vpop.f32.mrb[42].mxu0  ;;  %v723_v17 = vmax.f32 %v588_v12, 0.0  ;;  %v1418_v12 = vld [vmem:[%s1674_s3 + $0x18] sm:$0xff]  }
 0x134   :  { %v726_v15 = vmax.f32 %v1271_v13, 0.0  ;;  %v591_v16 = vpop.f32.mrb[43].mxu0  ;;  %v1419_v13 = vld [vmem:[%s1674_s3 + $0x20] sm:$0xff]  }
 0x135   :  { %v724_v18 = vmax.f32 %v591_v16, 0.0  ;;  %v1422_v16 = vld [vmem:[%s1674_s3 + $0x38] sm:$0xff]  }
 0x136   :  { %v1366_v19 = vpack.c.bf16 %v726_v15, %v725_v14  ;;  %v1420_v14 = vld [vmem:[%s1674_s3 + $0x28] sm:$0xff]   ;;  %v1421_v15 = vld [vmem:[%s1674_s3 + $0x30] sm:$0xff]  }
 0x137   :  { %v1362_v20 = vpack.c.bf16 %v724_v18, %v723_v17 }
 0x139   :  { %v1274_v21 = vpop.f32.mrb[44].mxu0 }
 0x13a   :  { %v604_v22 = vpop.f32.mrb[45].mxu0  ;;  %v729_v24 = vmax.f32 %v1274_v21, 0.0 }
 0x13b   :  { %v1275_v23 = vpop.f32.mrb[46].mxu0  ;;  %v727_v27 = vmax.f32 %v604_v22, 0.0 }
 0x13c   :  { %v730_v25 = vmax.f32 %v1275_v23, 0.0  ;;  %v607_v26 = vpop.f32.mrb[47].mxu0 }
 0x13d   :  { %v728_v28 = vmax.f32 %v607_v26, 0.0 }
 0x13e   :  { %v1374_v29 = vpack.c.bf16 %v730_v25, %v729_v24  ;;  %v1099_v25 = vld [vmem:[%s1675_s4] ss:$0 sm:$0xff] }
 0x13f   :  { %v1370_v30 = vpack.c.bf16 %v728_v28, %v727_v27 }
 0x141   :  { %v1278_v31 = vpop.f32.mrb[48].mxu0 }
 0x142   :  { %v620_v32 = vpop.f32.mrb[49].mxu0  ;;  %v733_v34 = vmax.f32 %v1278_v31, 0.0 }
 0x143   :  { %v1279_v33 = vpop.f32.mrb[50].mxu0  ;;  %v731_v37 = vmax.f32 %v620_v32, 0.0 }
 0x144   :  { %v734_v35 = vmax.f32 %v1279_v33, 0.0  ;;  %v623_v36 = vpop.f32.mrb[51].mxu0 }
 0x145   :  { %v732_v38 = vmax.f32 %v623_v36, 0.0 }
 0x146   :  { %v1348_v39 = vpack.c.bf16 %v734_v35, %v733_v34 }
 0x147   :  { %v1344_v40 = vpack.c.bf16 %v732_v38, %v731_v37 }
 0x149   :  { %v1282_v41 = vpop.f32.mrb[52].mxu0  ;;  %1345 = vmatprep.subr.bf16.mxu1 %v1344_v40 }
 0x14a   :  { %v636_v42 = vpop.f32.mrb[53].mxu0  ;;  %1347 = vmatpush3.bf16.msra.mxu1 %v1346_v63  ;;  %v737_v44 = vmax.f32 %v1282_v41, 0.0 }
 0x14b   :  { %v1283_v43 = vpop.f32.mrb[54].mxu0  ;;  %1349 = vmatprep.subr.bf16.mxu1 %v1348_v39  ;;  %v735_v47 = vmax.f32 %v636_v42, 0.0 }
 0x14c   :  { %v738_v45 = vmax.f32 %v1283_v43, 0.0  ;;  %v639_v46 = vpop.f32.mrb[55].mxu0 }
 0x14d   :  { %v736_v48 = vmax.f32 %v639_v46, 0.0 }
 0x14e   :  { %v1356_v49 = vpack.c.bf16 %v738_v45, %v737_v44  ;;  %1351 = vmatpush3.bf16.msra.mxu1 %v1350_v61 }
 0x14f   :  { %v1352_v50 = vpack.c.bf16 %v736_v48, %v735_v47 }
 0x151   :  { %v1286_v51 = vpop.f32.mrb[56].mxu0  ;;  %1353 = vmatprep.subr.bf16.mxu1 %v1352_v50 }
 0x152   :  { %v652_v52 = vpop.f32.mrb[57].mxu0  ;;  %1355 = vmatpush3.bf16.msra.mxu1 %v1354_v10  ;;  %v741_v54 = vmax.f32 %v1286_v51, 0.0  ;;  %v1416_v10 = vld [vmem:[%s1674_s3 + $0x8] sm:$0xff]   ;;  %s1423_s3 = scalar_lea.vmem %s1019_s9, 128 }
 0x153   :  { %v1287_v53 = vpop.f32.mrb[58].mxu0  ;;  %1357 = vmatprep.subr.bf16.mxu1 %v1356_v49  ;;  %v739_v57 = vmax.f32 %v652_v52, 0.0  ;;  %p1424_p0 = scmp.ne.s32.totalorder %s1019_s9, %s1423_s3  ;;  %p1429_p2 = scmp.lt.s32.totalorder %s1423_s3, %s1423_s3 }
 0x154   :  { %v742_v55 = vmax.f32 %v1287_v53, 0.0  ;;  %v655_v56 = vpop.f32.mrb[59].mxu0 }
 0x155   :  { %v740_v58 = vmax.f32 %v655_v56, 0.0  ;;  %p1430_p3 = por %p1429_p2, %p1428_p1 }
 0x156   :  { %v1364_v59 = vpack.c.bf16 %v742_v55, %v741_v54  ;;  %1359 = vmatpush3.bf16.msra.mxu1 %v1358_v9  ;;  %v1447_v9 = vmov 0.0  }
 0x157   :  { %v1360_v60 = vpack.c.bf16 %v740_v58, %v739_v57  ;;  %p1431_p4 = pnand %p1430_p3, %p1424_p0 }
 0x159   :  { %v1290_v62 = vpop.f32.mrb[60].mxu0  ;;  %1361 = vmatprep.subr.bf16.mxu1 %v1360_v60 }
 0x15a   :  { %v668_v63 = vpop.f32.mrb[61].mxu0  ;;  %1363 = vmatpush3.bf16.msra.mxu1 %v1362_v20  ;;  %v745_v0 = vmax.f32 %v1290_v62, 0.0 }
 0x15b   :  { %v1291_v61 = vpop.f32.mrb[62].mxu0  ;;  %1365 = vmatprep.subr.bf16.mxu1 %v1364_v59  ;;  %v743_v3 = vmax.f32 %v668_v63, 0.0 }
 0x15c   :  { %v746_v1 = vmax.f32 %v1291_v61, 0.0  ;;  %v671_v2 = vpop.f32.mrb[63].mxu0 }
 0x15d   :  { %v744_v4 = vmax.f32 %v671_v2, 0.0 }
 0x15e   :  { %v1372_v5 = vpack.c.bf16 %v746_v1, %v745_v0  ;;  %1367 = vmatpush3.bf16.msra.mxu1 %v1366_v19 }
 0x15f   :  { %v1368_v6 = vpack.c.bf16 %v744_v4, %v743_v3 }
 0x161   :  { %1369 = vmatprep.subr.bf16.mxu1 %v1368_v6 }
 0x162   :  { %1371 = vmatpush3.bf16.msra.mxu1 %v1370_v30 }
 0x163   :  { %1373 = vmatprep.subr.bf16.mxu1 %v1372_v5 }
 0x166   :  { %1375 = vmatpush3.bf16.msra.mxu1 %v1374_v29 }
 0x167   :  { %1292 = vmatprep.subr.bf16.mxu1 %v1447_v9 }
 0x169   :  { %887 = vmatmul.mubr.f32.vlgmr.msra.gmra.mrb[2].mxu1 %v750_v7 }
 0x16a   :  { %1293 = vmatpush3.bf16.msra.mxu1 %v1415_v8  ;;  %1308 = vmatprep.mubr.msk.bf16.mxu1 %vm1448_vm2, %v1447_v9 }
 0x16b   :  { %1294 = vmatprep.subr.bf16.mxu1 %v1447_v9 }
 0x16e   :  { %1295 = vmatpush3.bf16.msra.mxu1 %v1416_v10 }
 0x16f   :  { %1296 = vmatprep.subr.bf16.mxu1 %v1447_v9 }
 0x172   :  { %1297 = vmatpush3.bf16.msra.mxu1 %v1417_v11 }
 0x173   :  { %1298 = vmatprep.subr.bf16.mxu1 %v1447_v9 }
 0x176   :  { %1299 = vmatpush3.bf16.msra.mxu1 %v1418_v12 }
 0x177   :  { %1300 = vmatprep.subr.bf16.mxu1 %v1447_v9 }
 0x17a   :  { %1301 = vmatpush3.bf16.msra.mxu1 %v1419_v13 }
 0x17b   :  { %1302 = vmatprep.subr.bf16.mxu1 %v1447_v9 }
 0x17e   :  { %1303 = vmatpush3.bf16.msra.mxu1 %v1420_v14 }
 0x17f   :  { %1304 = vmatprep.subr.bf16.mxu1 %v1447_v9 }
 0x182   :  { %1305 = vmatpush3.bf16.msra.mxu1 %v1421_v15 }
 0x183   :  { %1306 = vmatprep.subr.bf16.mxu1 %v1447_v9 }
 0x186   :  { %1307 = vmatpush3.bf16.msra.mxu1 %v1422_v16 }
 0x1fc   :  { %v1175_v17 = vpop.f32.mrb[0].mxu1 }
 0x1fd   :  { %v1176_v18 = vpop.f32.mrb[1].mxu1 }
 0x1fe   :  { %v1177_v19 = vadd.f32 %v1176_v18, %v1175_v17 }
 0x23c   :  { %v1210_v20 = vpop.f32.mrb[2].mxu1 }
 0x23d   :  { %v1211_v21 = vpop.f32.mrb[3].mxu1 }
 0x23e   :  { %v1212_v22 = vadd.f32 %v1211_v21, %v1210_v20 }
 0x240   :  { %v889_v23 = vadd.f32 %v1212_v22, %v1177_v19 }
 0x242   :  { %v898_v24 = vpack.c.bf16 %v889_v23, %v889_v23 }
 0x244   :  { %1309 = vmatmul.mubr.bf16.vlgmr.msra.gmra.mrb[4].mxu1 %v898_v24 }
 0x317   :  { %v1004_v26 = vpop.f32.mrb[4].mxu1 }
 0x318   :  { %v1005_v27 = vadd.f32 %v1099_v25, %v1004_v26  ;;  %v1310_v28 = vpop.f32.mrb[5].mxu1 }
 0x319   :  { %v1007_v29 = vpop.f32.mrb[6].mxu1 }
 0x31a   :  { %v1010_v30 = vmax.f32 %v1005_v27, 0.0  ;;  %v1311_v31 = vpop.f32.mrb[7].mxu1 }
 0x31c   :  { %1011 = vst [vmem:[#allocation3] sm:$0xff] %v1010_v30 }
 0x31d   :  { %1434 = shalt.err (!%p1431_p4)
}
 0x31e   :  { %s1435_s4 = scalar_lea.hbm %s1676_s5, 128 }
 0x31f   :  { %p1436_p5 = scmp.ne.s32.totalorder %s1676_s5, %s1435_s4  ;;  %p1439_p6 = scmp.lt.u32.totalorder %s1435_s4, %s1676_s5 }
 0x321   :  { %p1441_p7 = pnand %p1439_p6, %p1436_p5 }
 0x323   :  { %1444 = shalt.err (!%p1441_p7)
}
 0x324   :  { %1021 = dma.vmem_to_hbm [thread:$0]  %s1019_s9, 128, %s1676_s5, [#allocation4]  }
 0x325   :  { %1445 = dma.done.wait [#allocation4], 128  }
 0x326   :  { %1446 = vsyncadd [#allocation4], 4294967168 }
 0x327   :  { %1025 = vsyncpa [#allocation4], 1 }

</bundles_post_ra>
